<compile_context>
chip_gen: v5e
topology: v5e:2x2
jax: 0.10.0
libtpu: 0.0.40
codegen_flags: <defaults>
</compile_context>

<pallas_src>
import functools

import jax
import jax.numpy as jnp
from jax import lax
from jax.experimental import pallas as pl
from jax.experimental.pallas import tpu as pltpu


# ---------------------------------------------------------------------------
# helpers
# ---------------------------------------------------------------------------
def _loop_heads(num_heads, unroll, body):
    """Static unroll for small head counts, in-kernel scf.for otherwise."""
    if unroll:
        for h in range(num_heads):
            body(h)
    else:
        pl.loop(0, num_heads)(body)


def _tile_bytes(shape, itemsize):
    """VMEM footprint of a tile with (8, 128) layout padding on the last two dims."""
    dims = list(shape)
    if len(dims) >= 1:
        dims[-1] = -(-dims[-1] // 128) * 128
    if len(dims) >= 2:
        dims[-2] = -(-dims[-2] // 8) * 8
    n = 1
    for d in dims:
        n *= d
    return n * itemsize


def _vmem_limit_bytes(pipelined_bytes, scratch_bytes=0):
    """Generation-aware scoped-VMEM budget: double-buffered pipeline blocks +
    persistent scratch with 2x headroom, capped below the physical VMEM of the
    current chip (64 MiB v7x / 128 MiB v5e,v6e) to leave Mosaic headroom."""
    try:
        cap = int(getattr(pltpu.get_tpu_info(), "vmem_capacity_bytes", 128 << 20))
    except Exception:
        cap = 128 << 20
    ceiling = max(min(int(cap * 3 // 4), 100 << 20), 32 << 20)
    need = 2 * (2 * pipelined_bytes + scratch_bytes)
    return int(min(max(need, 32 << 20), ceiling))


def _pick_tile(n, preferred):
    for t in preferred:
        if n % t == 0:
            return t
    return n


# ---------------------------------------------------------------------------
# Kernel A: head-major K/V projection
# ---------------------------------------------------------------------------
def _kv_proj_kernel(x_ref, wk_ref, wv_ref, k_ref, v_ref, *, num_heads, unroll_heads):
    # x_ref: (1, ts, C); wk_ref/wv_ref: (H, C, hd); k_ref/v_ref: (1, H, ts, hd)
    def proj(h):
        x = x_ref[0]                                              # (ts, C)
        k_ref[0, h] = jnp.dot(x, wk_ref[h],
                              preferred_element_type=jnp.float32).astype(k_ref.dtype)
        v_ref[0, h] = jnp.dot(x, wv_ref[h],
                              preferred_element_type=jnp.float32).astype(v_ref.dtype)

    _loop_heads(num_heads, unroll_heads, proj)


# ---------------------------------------------------------------------------
# Kernel B: fused Q projection + flash attention (online softmax) + W_o
# ---------------------------------------------------------------------------
def _flash_attn_kernel(x_ref, k_ref, v_ref, wq_ref, wo_ref, o_ref,
                       q_sc, m_sc, l_sc, acc_sc, oacc_sc,
                       *, num_heads, approx_reciprocal, unroll_heads):
    # x_ref:  (1, tq, C)            wq_ref: (H, C, hd)  (= Wq^T / sqrt(hd), head-major)
    # k_ref/v_ref: (1, H, tk, hd)   wo_ref: (H, hd, C)  (= Wo^T, head-major rows)
    # q_sc:   (H, tq, hd) compute-dtype Q tile, computed once at ki == 0
    # m_sc/l_sc: (H, tq, 1) f32 online-softmax running max / sum
    # acc_sc: (H, tq, hd) f32 per-head accumulator slab
    # oacc_sc: (tq, C) f32 output-projection accumulator
    # NOTE: correctness of the init/finalize pattern requires the kv axis to be
    # the LAST (fastest-varying) grid axis and the x/out blocks ki-invariant.
    ki = pl.program_id(2)

    @pl.when(ki == 0)
    def _init():
        m_sc[...] = jnp.full(m_sc.shape, -jnp.inf, dtype=m_sc.dtype)
        l_sc[...] = jnp.zeros(l_sc.shape, dtype=l_sc.dtype)
        acc_sc[...] = jnp.zeros(acc_sc.shape, dtype=acc_sc.dtype)

        def proj_q(h):
            q_sc[h] = jnp.dot(x_ref[0], wq_ref[h],
                              preferred_element_type=jnp.float32).astype(q_sc.dtype)

        _loop_heads(num_heads, unroll_heads, proj_q)

    def attend(h):
        qh = q_sc[h]                    # (tq, hd)
        kh = k_ref[0, h]                # (tk, hd)
        vh = v_ref[0, h]                # (tk, hd)
        # scores (tq, tk) = qh @ kh^T via contracting dims (no explicit transpose)
        s = lax.dot_general(qh, kh, (((1,), (1,)), ((), ())),
                            preferred_element_type=jnp.float32)
        m_prev = m_sc[h]
        m_new = jnp.maximum(m_prev, jnp.max(s, axis=-1, keepdims=True))
        alpha = jnp.exp(m_prev - m_new)
        p = jnp.exp(s - m_new)                                    # f32 softmax math
        l_sc[h] = alpha * l_sc[h] + jnp.sum(p, axis=-1, keepdims=True)
        acc_sc[h] = alpha * acc_sc[h] + jnp.dot(
            p.astype(vh.dtype), vh, preferred_element_type=jnp.float32)
        m_sc[h] = m_new

    _loop_heads(num_heads, unroll_heads, attend)

    @pl.when(ki == pl.num_programs(2) - 1)
    def _finalize():
        oacc_sc[...] = jnp.zeros(oacc_sc.shape, dtype=oacc_sc.dtype)

        def proj_o(h):
            if approx_reciprocal:
                inv_l = pl.reciprocal(l_sc[h], approx=True)       # EUP slot
            else:
                inv_l = 1.0 / l_sc[h]                             # exact parity path
            head_out = (acc_sc[h] * inv_l).astype(wo_ref.dtype)   # (tq, hd)
            oacc_sc[...] += jnp.dot(head_out, wo_ref[h],
                                    preferred_element_type=jnp.float32)

        _loop_heads(num_heads, unroll_heads, proj_o)
        o_ref[0] = oacc_sc[...].astype(o_ref.dtype)


# ---------------------------------------------------------------------------
# Wrapper
# ---------------------------------------------------------------------------
def self_attention_pallas(x, wq, wk, wv, wo, num_heads, *,
                          compute_dtype=None, approx_reciprocal=True):
    """Forward pass of the PyTorch SelfAttention module (weights are (out, in))."""
    B, N, C = x.shape
    assert C % num_heads == 0, "embed_dim must be divisible by num_heads"
    head_dim = C // num_heads
    inv_scale = 1.0 / float(head_dim) ** 0.5

    # bf16 MXU inputs / f32 accumulation by default (2-4x MXU rate on all gens);
    # pass compute_dtype=jnp.float32 for strict f32 parity.
    if compute_dtype is None:
        cdt = jnp.dtype(jnp.bfloat16) if x.dtype == jnp.float32 else jnp.dtype(x.dtype)
    else:
        cdt = jnp.dtype(compute_dtype)
    esize = cdt.itemsize

    # Wrapper-side weight prep (once, off the hot path): transpose to (in, out),
    # fold 1/sqrt(hd) into W_q, reshape to head-major slabs so every in-kernel
    # head access is a leading-axis index.
    def _head_major(w, scale=1.0):                                 # -> (H, C_in, hd)
        wt = w.astype(jnp.float32).T * scale                       # (C_in, C_out)
        return wt.reshape(C, num_heads, head_dim).transpose(1, 0, 2).astype(cdt)

    wq_h = _head_major(wq, inv_scale)                              # (H, C, hd)
    wk_h = _head_major(wk)
    wv_h = _head_major(wv)
    wo_h = wo.astype(jnp.float32).T.reshape(num_heads, head_dim, C).astype(cdt)

    x_c = x.astype(cdt)

    # Tile selection (v6e/v7x 256-wide MXU; 128x256 f32 score tile = 32 vregs).
    seq_tile = _pick_tile(N, (256, 128, 64, 32, 16, 8))
    q_tile = _pick_tile(N, (128, 256, 64, 32, 16, 8))
    kv_tile = _pick_tile(N, (256, 128, 64, 32, 16, 8))
    # v7x has 2 TensorCores: keep at least 2 parallel (b, qi) iterations.
    while B * (N // q_tile) < 2 and q_tile > 8 and q_tile % 2 == 0:
        q_tile //= 2

    unroll_heads = num_heads <= 4

    # --- Kernel A: K/V projection (head-major outputs) ------------------------
    blocks_a = (_tile_bytes((seq_tile, C), esize)
                + 2 * _tile_bytes((num_heads, C, head_dim), esize)
                + 2 * _tile_bytes((num_heads, seq_tile, head_dim), esize))
    k, v = pl.pallas_call(
        functools.partial(_kv_proj_kernel, num_heads=num_heads,
                          unroll_heads=unroll_heads),
        out_shape=[jax.ShapeDtypeStruct((B, num_heads, N, head_dim), cdt)
                   for _ in range(2)],
        grid_spec=pltpu.PrefetchScalarGridSpec(
            num_scalar_prefetch=0,
            grid=(B, N // seq_tile),
            in_specs=[
                pl.BlockSpec((1, seq_tile, C), lambda b, s: (b, s, 0)),
                pl.BlockSpec((num_heads, C, head_dim), lambda b, s: (0, 0, 0)),
                pl.BlockSpec((num_heads, C, head_dim), lambda b, s: (0, 0, 0)),
            ],
            out_specs=[pl.BlockSpec((1, num_heads, seq_tile, head_dim),
                                    lambda b, s: (b, 0, s, 0)) for _ in range(2)],
        ),
        compiler_params=pltpu.CompilerParams(
            dimension_semantics=("parallel", "parallel"),
            vmem_limit_bytes=_vmem_limit_bytes(blocks_a)),
    )(x_c, wk_h, wv_h)

    # --- Kernel B: fused Q proj + flash attention + W_o -----------------------
    blocks_b = (_tile_bytes((q_tile, C), esize)
                + 2 * _tile_bytes((num_heads, kv_tile, head_dim), esize)
                + _tile_bytes((num_heads, C, head_dim), esize)
                + _tile_bytes((num_heads, head_dim, C), esize)
                + _tile_bytes((q_tile, C), esize))
    scratch_b = (_tile_bytes((num_heads, q_tile, head_dim), esize)         # q_sc
                 + 2 * _tile_bytes((num_heads, q_tile, 1), 4)              # m, l
                 + _tile_bytes((num_heads, q_tile, head_dim), 4)           # acc
                 + _tile_bytes((q_tile, C), 4))                            # oacc
    out = pl.pallas_call(
        functools.partial(_flash_attn_kernel, num_heads=num_heads,
                          approx_reciprocal=approx_reciprocal,
                          unroll_heads=unroll_heads),
        out_shape=jax.ShapeDtypeStruct((B, N, C), x.dtype),
        grid_spec=pltpu.PrefetchScalarGridSpec(
            num_scalar_prefetch=0,
            grid=(B, N // q_tile, N // kv_tile),     # kv axis LAST (online softmax)
            in_specs=[
                pl.BlockSpec((1, q_tile, C), lambda b, qi, ki: (b, qi, 0)),
                pl.BlockSpec((1, num_heads, kv_tile, head_dim),
                             lambda b, qi, ki: (b, 0, ki, 0)),
                pl.BlockSpec((1, num_heads, kv_tile, head_dim),
                             lambda b, qi, ki: (b, 0, ki, 0)),
                pl.BlockSpec((num_heads, C, head_dim), lambda b, qi, ki: (0, 0, 0)),
                pl.BlockSpec((num_heads, head_dim, C), lambda b, qi, ki: (0, 0, 0)),
            ],
            out_specs=pl.BlockSpec((1, q_tile, C), lambda b, qi, ki: (b, qi, 0)),
            scratch_shapes=[
                pltpu.VMEM((num_heads, q_tile, head_dim), cdt),            # Q tile
                pltpu.VMEM((num_heads, q_tile, 1), jnp.float32),           # running max
                pltpu.VMEM((num_heads, q_tile, 1), jnp.float32),           # running sum
                pltpu.VMEM((num_heads, q_tile, head_dim), jnp.float32),    # per-head acc
                pltpu.VMEM((q_tile, C), jnp.float32),                      # W_o acc
            ],
        ),
        compiler_params=pltpu.CompilerParams(
            dimension_semantics=("parallel", "parallel", "arbitrary"),
            vmem_limit_bytes=_vmem_limit_bytes(blocks_b, scratch_b)),
    )(x_c, k, v, wq_h, wo_h)
    return out


# ---------------------------------------------------------------------------
# Pure-JAX reference mirroring the PyTorch forward
# ---------------------------------------------------------------------------
def self_attention_ref(x, wq, wk, wv, wo, num_heads):
    B, N, C = x.shape
    hd = C // num_heads
    scale = float(hd) ** 0.5

    def proj(w):
        y = jnp.einsum("bnc,oc->bno", x, w)                                # x @ W^T
        return y.reshape(B, N, num_heads, hd).transpose(0, 2, 1, 3)        # (B,H,N,hd)

    Q, K, V = proj(wq), proj(wk), proj(wv)
    s = jnp.einsum("bhnd,bhmd->bhnm", Q, K) / scale
    p = jax.nn.softmax(s, axis=-1)
    o = jnp.einsum("bhnm,bhmd->bhnd", p, V)
    o = o.transpose(0, 2, 1, 3).reshape(B, N, C)
    return jnp.einsum("bnc,oc->bno", o, wo)


if __name__ == "__main__":
    # Small shapes consistent with the module: batch=2, seq=8, embed=32, heads=4.
    B, N, C, H = 2, 8, 32, 4
    key = jax.random.PRNGKey(0)
    kx, kq, kk, kv_, ko = jax.random.split(key, 5)
    x = jax.random.normal(kx, (B, N, C), dtype=jnp.float32)
    wq = jax.random.normal(kq, (C, C), dtype=jnp.float32) * 0.1
    wk = jax.random.normal(kk, (C, C), dtype=jnp.float32) * 0.1
    wv = jax.random.normal(kv_, (C, C), dtype=jnp.float32) * 0.1
    wo = jax.random.normal(ko, (C, C), dtype=jnp.float32) * 0.1
    ref = self_attention_ref(x, wq, wk, wv, wo, num_heads=H)

    # 1) strict f32 compute + exact reciprocal (eval parity path)
    out = jax.block_until_ready(self_attention_pallas(
        x, wq, wk, wv, wo, num_heads=H,
        compute_dtype=jnp.float32, approx_reciprocal=False))
    assert out.shape == (B, N, C)
    assert jnp.allclose(out, ref, atol=2e-3, rtol=2e-3), "strict f32 mismatch"

    # 2) default fast path: bf16 MXU inputs / f32 accumulation, EUP reciprocal
    out_fast = jax.block_until_ready(
        self_attention_pallas(x, wq, wk, wv, wo, num_heads=H))
    assert jnp.allclose(out_fast, ref, atol=5e-2, rtol=5e-2), "bf16-compute mismatch"

    # 3) larger config: multiple q/kv tiles and the pl.loop head path (H=8)
    B2, N2, C2, H2 = 2, 512, 256, 8
    k2 = jax.random.split(jax.random.PRNGKey(1), 5)
    x2 = jax.random.normal(k2[0], (B2, N2, C2), dtype=jnp.float32)
    ws2 = [jax.random.normal(k2[i], (C2, C2), dtype=jnp.float32) * (1.0 / C2 ** 0.5)
           for i in range(1, 5)]
    out2 = jax.block_until_ready(self_attention_pallas(
        x2, *ws2, num_heads=H2, compute_dtype=jnp.float32))
    ref2 = self_attention_ref(x2, *ws2, num_heads=H2)
    assert jnp.allclose(out2, ref2, atol=5e-3, rtol=5e-3), "tiled f32 mismatch"

    # 4) bf16 inputs end-to-end
    xb = x.astype(jnp.bfloat16)
    wb = [w.astype(jnp.bfloat16) for w in (wq, wk, wv, wo)]
    outb = jax.block_until_ready(self_attention_pallas(xb, *wb, num_heads=H))
    refb = self_attention_ref(xb.astype(jnp.float32),
                              *[w.astype(jnp.float32) for w in wb], num_heads=H)
    assert outb.dtype == jnp.bfloat16
    assert jnp.allclose(outb.astype(jnp.float32), refb, atol=7e-2, rtol=7e-2), \
        "bf16 mismatch vs reference"

    print("KERNEL_OK")
</pallas_src>

<mosaic_0001>
module attributes {stable_mosaic.version = 11 : i64} {
  func.func @_kv_proj_kernel(%arg0: i32, %arg1: i32, %arg2: memref<1x8x32xf32, #tpu.memory_space<vmem>>, %arg3: memref<4x32x8xf32, #tpu.memory_space<vmem>>, %arg4: memref<4x32x8xf32, #tpu.memory_space<vmem>>, %arg5: memref<1x4x8x8xf32, #tpu.memory_space<vmem>>, %arg6: memref<1x4x8x8xf32, #tpu.memory_space<vmem>>) attributes {dimension_semantics = [#tpu.dimension_semantics<parallel>, #tpu.dimension_semantics<parallel>], iteration_bounds = array<i64: 2, 1>, scalar_prefetch = 0 : i64, scratch_operands = 0 : i64, tpu.core_type = #tpu.core_type<tc>, window_params = [{transform_indices = @transform_0, window_bounds = array<i64: 1, 8, 32>}, {pipeline_mode = #tpu.pipeline_mode<synchronous>, transform_indices = @transform_1, window_bounds = array<i64: 4, 32, 8>}, {pipeline_mode = #tpu.pipeline_mode<synchronous>, transform_indices = @transform_2, window_bounds = array<i64: 4, 32, 8>}, {transform_indices = @transform_3, window_bounds = array<i64: 1, 4, 8, 8>}, {transform_indices = @transform_4, window_bounds = array<i64: 1, 4, 8, 8>}]} {
    %c0 = arith.constant 0 : index
    %c0_0 = arith.constant 0 : index
    %c0_1 = arith.constant 0 : index
    %0 = vector.load %arg2[%c0, %c0_0, %c0_1] : memref<1x8x32xf32, #tpu.memory_space<vmem>>, vector<1x8x32xf32>
    %1 = vector.shape_cast %0 : vector<1x8x32xf32> to vector<8x32xf32>
    %c0_2 = arith.constant 0 : index
    %c0_3 = arith.constant 0 : index
    %c0_4 = arith.constant 0 : index
    %2 = vector.load %arg3[%c0_2, %c0_3, %c0_4] : memref<4x32x8xf32, #tpu.memory_space<vmem>>, vector<1x32x8xf32>
    %3 = vector.shape_cast %2 : vector<1x32x8xf32> to vector<32x8xf32>
    %cst = arith.constant dense<0.000000e+00> : vector<8x8xf32>
    %4 = tpu.matmul %1, %3, %cst {dimension_numbers = #tpu.dot_dimension_numbers<[1], [0], [0], [1], [0, 0, 1, 1], [], []>} : vector<8x32xf32>, vector<32x8xf32>, vector<8x8xf32> -> vector<8x8xf32>
    %c0_5 = arith.constant 0 : index
    %c0_6 = arith.constant 0 : index
    %c0_7 = arith.constant 0 : index
    %c0_8 = arith.constant 0 : index
    %5 = vector.load %arg5[%c0_5, %c0_6, %c0_7, %c0_8] : memref<1x4x8x8xf32, #tpu.memory_space<vmem>>, vector<1x1x8x8xf32>
    %6 = vector.shape_cast %5 : vector<1x1x8x8xf32> to vector<8x8xf32>
    %7 = vector.shape_cast %4 : vector<8x8xf32> to vector<1x1x8x8xf32>
    tpu.vector_store %arg5[%c0_5, %c0_6, %c0_7, %c0_8], %7 {strides = array<i32>} : memref<1x4x8x8xf32, #tpu.memory_space<vmem>>, vector<1x1x8x8xf32>,
    %c0_9 = arith.constant 0 : index
    %c0_10 = arith.constant 0 : index
    %c0_11 = arith.constant 0 : index
    %8 = vector.load %arg4[%c0_9, %c0_10, %c0_11] : memref<4x32x8xf32, #tpu.memory_space<vmem>>, vector<1x32x8xf32>
    %9 = vector.shape_cast %8 : vector<1x32x8xf32> to vector<32x8xf32>
    %cst_12 = arith.constant dense<0.000000e+00> : vector<8x8xf32>
    %10 = tpu.matmul %1, %9, %cst_12 {dimension_numbers = #tpu.dot_dimension_numbers<[1], [0], [0], [1], [0, 0, 1, 1], [], []>} : vector<8x32xf32>, vector<32x8xf32>, vector<8x8xf32> -> vector<8x8xf32>
    %c0_13 = arith.constant 0 : index
    %c0_14 = arith.constant 0 : index
    %c0_15 = arith.constant 0 : index
    %c0_16 = arith.constant 0 : index
    %11 = vector.load %arg6[%c0_13, %c0_14, %c0_15, %c0_16] : memref<1x4x8x8xf32, #tpu.memory_space<vmem>>, vector<1x1x8x8xf32>
    %12 = vector.shape_cast %11 : vector<1x1x8x8xf32> to vector<8x8xf32>
    %13 = vector.shape_cast %10 : vector<8x8xf32> to vector<1x1x8x8xf32>
    tpu.vector_store %arg6[%c0_13, %c0_14, %c0_15, %c0_16], %13 {strides = array<i32>} : memref<1x4x8x8xf32, #tpu.memory_space<vmem>>, vector<1x1x8x8xf32>,
    %c0_17 = arith.constant 0 : index
    %c0_18 = arith.constant 0 : index
    %c0_19 = arith.constant 0 : index
    %14 = vector.load %arg2[%c0_17, %c0_18, %c0_19] : memref<1x8x32xf32, #tpu.memory_space<vmem>>, vector<1x8x32xf32>
    %15 = vector.shape_cast %14 : vector<1x8x32xf32> to vector<8x32xf32>
    %c1 = arith.constant 1 : index
    %c0_20 = arith.constant 0 : index
    %c0_21 = arith.constant 0 : index
    %16 = vector.load %arg3[%c1, %c0_20, %c0_21] : memref<4x32x8xf32, #tpu.memory_space<vmem>>, vector<1x32x8xf32>
    %17 = vector.shape_cast %16 : vector<1x32x8xf32> to vector<32x8xf32>
    %cst_22 = arith.constant dense<0.000000e+00> : vector<8x8xf32>
    %18 = tpu.matmul %15, %17, %cst_22 {dimension_numbers = #tpu.dot_dimension_numbers<[1], [0], [0], [1], [0, 0, 1, 1], [], []>} : vector<8x32xf32>, vector<32x8xf32>, vector<8x8xf32> -> vector<8x8xf32>
    %c0_23 = arith.constant 0 : index
    %c1_24 = arith.constant 1 : index
    %c0_25 = arith.constant 0 : index
    %c0_26 = arith.constant 0 : index
    %19 = vector.load %arg5[%c0_23, %c1_24, %c0_25, %c0_26] : memref<1x4x8x8xf32, #tpu.memory_space<vmem>>, vector<1x1x8x8xf32>
    %20 = vector.shape_cast %19 : vector<1x1x8x8xf32> to vector<8x8xf32>
    %21 = vector.shape_cast %18 : vector<8x8xf32> to vector<1x1x8x8xf32>
    tpu.vector_store %arg5[%c0_23, %c1_24, %c0_25, %c0_26], %21 {strides = array<i32>} : memref<1x4x8x8xf32, #tpu.memory_space<vmem>>, vector<1x1x8x8xf32>,
    %c1_27 = arith.constant 1 : index
    %c0_28 = arith.constant 0 : index
    %c0_29 = arith.constant 0 : index
    %22 = vector.load %arg4[%c1_27, %c0_28, %c0_29] : memref<4x32x8xf32, #tpu.memory_space<vmem>>, vector<1x32x8xf32>
    %23 = vector.shape_cast %22 : vector<1x32x8xf32> to vector<32x8xf32>
    %cst_30 = arith.constant dense<0.000000e+00> : vector<8x8xf32>
    %24 = tpu.matmul %15, %23, %cst_30 {dimension_numbers = #tpu.dot_dimension_numbers<[1], [0], [0], [1], [0, 0, 1, 1], [], []>} : vector<8x32xf32>, vector<32x8xf32>, vector<8x8xf32> -> vector<8x8xf32>
    %c0_31 = arith.constant 0 : index
    %c1_32 = arith.constant 1 : index
    %c0_33 = arith.constant 0 : index
    %c0_34 = arith.constant 0 : index
    %25 = vector.load %arg6[%c0_31, %c1_32, %c0_33, %c0_34] : memref<1x4x8x8xf32, #tpu.memory_space<vmem>>, vector<1x1x8x8xf32>
    %26 = vector.shape_cast %25 : vector<1x1x8x8xf32> to vector<8x8xf32>
    %27 = vector.shape_cast %24 : vector<8x8xf32> to vector<1x1x8x8xf32>
    tpu.vector_store %arg6[%c0_31, %c1_32, %c0_33, %c0_34], %27 {strides = array<i32>} : memref<1x4x8x8xf32, #tpu.memory_space<vmem>>, vector<1x1x8x8xf32>,
    %c0_35 = arith.constant 0 : index
    %c0_36 = arith.constant 0 : index
    %c0_37 = arith.constant 0 : index
    %28 = vector.load %arg2[%c0_35, %c0_36, %c0_37] : memref<1x8x32xf32, #tpu.memory_space<vmem>>, vector<1x8x32xf32>
    %29 = vector.shape_cast %28 : vector<1x8x32xf32> to vector<8x32xf32>
    %c2 = arith.constant 2 : index
    %c0_38 = arith.constant 0 : index
    %c0_39 = arith.constant 0 : index
    %30 = vector.load %arg3[%c2, %c0_38, %c0_39] : memref<4x32x8xf32, #tpu.memory_space<vmem>>, vector<1x32x8xf32>
    %31 = vector.shape_cast %30 : vector<1x32x8xf32> to vector<32x8xf32>
    %cst_40 = arith.constant dense<0.000000e+00> : vector<8x8xf32>
    %32 = tpu.matmul %29, %31, %cst_40 {dimension_numbers = #tpu.dot_dimension_numbers<[1], [0], [0], [1], [0, 0, 1, 1], [], []>} : vector<8x32xf32>, vector<32x8xf32>, vector<8x8xf32> -> vector<8x8xf32>
    %c0_41 = arith.constant 0 : index
    %c2_42 = arith.constant 2 : index
    %c0_43 = arith.constant 0 : index
    %c0_44 = arith.constant 0 : index
    %33 = vector.load %arg5[%c0_41, %c2_42, %c0_43, %c0_44] : memref<1x4x8x8xf32, #tpu.memory_space<vmem>>, vector<1x1x8x8xf32>
    %34 = vector.shape_cast %33 : vector<1x1x8x8xf32> to vector<8x8xf32>
    %35 = vector.shape_cast %32 : vector<8x8xf32> to vector<1x1x8x8xf32>
    tpu.vector_store %arg5[%c0_41, %c2_42, %c0_43, %c0_44], %35 {strides = array<i32>} : memref<1x4x8x8xf32, #tpu.memory_space<vmem>>, vector<1x1x8x8xf32>,
    %c2_45 = arith.constant 2 : index
    %c0_46 = arith.constant 0 : index
    %c0_47 = arith.constant 0 : index
    %36 = vector.load %arg4[%c2_45, %c0_46, %c0_47] : memref<4x32x8xf32, #tpu.memory_space<vmem>>, vector<1x32x8xf32>
    %37 = vector.shape_cast %36 : vector<1x32x8xf32> to vector<32x8xf32>
    %cst_48 = arith.constant dense<0.000000e+00> : vector<8x8xf32>
    %38 = tpu.matmul %29, %37, %cst_48 {dimension_numbers = #tpu.dot_dimension_numbers<[1], [0], [0], [1], [0, 0, 1, 1], [], []>} : vector<8x32xf32>, vector<32x8xf32>, vector<8x8xf32> -> vector<8x8xf32>
    %c0_49 = arith.constant 0 : index
    %c2_50 = arith.constant 2 : index
    %c0_51 = arith.constant 0 : index
    %c0_52 = arith.constant 0 : index
    %39 = vector.load %arg6[%c0_49, %c2_50, %c0_51, %c0_52] : memref<1x4x8x8xf32, #tpu.memory_space<vmem>>, vector<1x1x8x8xf32>
    %40 = vector.shape_cast %39 : vector<1x1x8x8xf32> to vector<8x8xf32>
    %41 = vector.shape_cast %38 : vector<8x8xf32> to vector<1x1x8x8xf32>
    tpu.vector_store %arg6[%c0_49, %c2_50, %c0_51, %c0_52], %41 {strides = array<i32>} : memref<1x4x8x8xf32, #tpu.memory_space<vmem>>, vector<1x1x8x8xf32>,
    %c0_53 = arith.constant 0 : index
    %c0_54 = arith.constant 0 : index
    %c0_55 = arith.constant 0 : index
    %42 = vector.load %arg2[%c0_53, %c0_54, %c0_55] : memref<1x8x32xf32, #tpu.memory_space<vmem>>, vector<1x8x32xf32>
    %43 = vector.shape_cast %42 : vector<1x8x32xf32> to vector<8x32xf32>
    %c3 = arith.constant 3 : index
    %c0_56 = arith.constant 0 : index
    %c0_57 = arith.constant 0 : index
    %44 = vector.load %arg3[%c3, %c0_56, %c0_57] : memref<4x32x8xf32, #tpu.memory_space<vmem>>, vector<1x32x8xf32>
    %45 = vector.shape_cast %44 : vector<1x32x8xf32> to vector<32x8xf32>
    %cst_58 = arith.constant dense<0.000000e+00> : vector<8x8xf32>
    %46 = tpu.matmul %43, %45, %cst_58 {dimension_numbers = #tpu.dot_dimension_numbers<[1], [0], [0], [1], [0, 0, 1, 1], [], []>} : vector<8x32xf32>, vector<32x8xf32>, vector<8x8xf32> -> vector<8x8xf32>
    %c0_59 = arith.constant 0 : index
    %c3_60 = arith.constant 3 : index
    %c0_61 = arith.constant 0 : index
    %c0_62 = arith.constant 0 : index
    %47 = vector.load %arg5[%c0_59, %c3_60, %c0_61, %c0_62] : memref<1x4x8x8xf32, #tpu.memory_space<vmem>>, vector<1x1x8x8xf32>
    %48 = vector.shape_cast %47 : vector<1x1x8x8xf32> to vector<8x8xf32>
    %49 = vector.shape_cast %46 : vector<8x8xf32> to vector<1x1x8x8xf32>
    tpu.vector_store %arg5[%c0_59, %c3_60, %c0_61, %c0_62], %49 {strides = array<i32>} : memref<1x4x8x8xf32, #tpu.memory_space<vmem>>, vector<1x1x8x8xf32>,
    %c3_63 = arith.constant 3 : index
    %c0_64 = arith.constant 0 : index
    %c0_65 = arith.constant 0 : index
    %50 = vector.load %arg4[%c3_63, %c0_64, %c0_65] : memref<4x32x8xf32, #tpu.memory_space<vmem>>, vector<1x32x8xf32>
    %51 = vector.shape_cast %50 : vector<1x32x8xf32> to vector<32x8xf32>
    %cst_66 = arith.constant dense<0.000000e+00> : vector<8x8xf32>
    %52 = tpu.matmul %43, %51, %cst_66 {dimension_numbers = #tpu.dot_dimension_numbers<[1], [0], [0], [1], [0, 0, 1, 1], [], []>} : vector<8x32xf32>, vector<32x8xf32>, vector<8x8xf32> -> vector<8x8xf32>
    %c0_67 = arith.constant 0 : index
    %c3_68 = arith.constant 3 : index
    %c0_69 = arith.constant 0 : index
    %c0_70 = arith.constant 0 : index
    %53 = vector.load %arg6[%c0_67, %c3_68, %c0_69, %c0_70] : memref<1x4x8x8xf32, #tpu.memory_space<vmem>>, vector<1x1x8x8xf32>
    %54 = vector.shape_cast %53 : vector<1x1x8x8xf32> to vector<8x8xf32>
    %55 = vector.shape_cast %52 : vector<8x8xf32> to vector<1x1x8x8xf32>
    tpu.vector_store %arg6[%c0_67, %c3_68, %c0_69, %c0_70], %55 {strides = array<i32>} : memref<1x4x8x8xf32, #tpu.memory_space<vmem>>, vector<1x1x8x8xf32>,
    return
  }
  func.func @transform_0(%arg0: i32, %arg1: i32) -> (i32, i32, i32) {
    %c0_i32 = arith.constant 0 : i32
    %c0_i32_0 = arith.constant 0 : i32
    return %arg0, %arg1, %c0_i32 : i32, i32, i32
  }
  func.func @transform_1(%arg0: i32, %arg1: i32) -> (i32, i32, i32) {
    %c0_i32 = arith.constant 0 : i32
    %c0_i32_0 = arith.constant 0 : i32
    %c0_i32_1 = arith.constant 0 : i32
    %c0_i32_2 = arith.constant 0 : i32
    return %c0_i32, %c0_i32_0, %c0_i32_1 : i32, i32, i32
  }
  func.func @transform_2(%arg0: i32, %arg1: i32) -> (i32, i32, i32) {
    %c0_i32 = arith.constant 0 : i32
    %c0_i32_0 = arith.constant 0 : i32
    %c0_i32_1 = arith.constant 0 : i32
    %c0_i32_2 = arith.constant 0 : i32
    return %c0_i32, %c0_i32_0, %c0_i32_1 : i32, i32, i32
  }
  func.func @transform_3(%arg0: i32, %arg1: i32) -> (i32, i32, i32, i32) {
    %c0_i32 = arith.constant 0 : i32
    %c0_i32_0 = arith.constant 0 : i32
    %c0_i32_1 = arith.constant 0 : i32
    return %arg0, %c0_i32, %arg1, %c0_i32_0 : i32, i32, i32, i32
  }
  func.func @transform_4(%arg0: i32, %arg1: i32) -> (i32, i32, i32, i32) {
    %c0_i32 = arith.constant 0 : i32
    %c0_i32_0 = arith.constant 0 : i32
    %c0_i32_1 = arith.constant 0 : i32
    return %arg0, %c0_i32, %arg1, %c0_i32_0 : i32, i32, i32, i32
  }
}

</mosaic_0001>

<bundles_post_ra>
// kernel: tpu_custom_call.1
= control target key start
LH: loop header
LB: loop body
LE: loop exit
PB: predicated region body
PF: predicated region fallthrough
CT: control target
= control target key end

     0   :  { %10 = vsyncpa [#allocation3], 0  ;;  %s1105_s0 = inlined_call_operand.vmem [shape: f32[2,8,32], index: 0, kind: input, shape index: {}]   ;;  %s1106_s1 = inlined_call_operand.vmem [shape: f32[4,32,8], index: 1, kind: input, shape index: {}]   ;;  %s1107_s2 = inlined_call_operand.vmem [shape: f32[4,32,8], index: 2, kind: input, shape index: {}]   ;;  %s1108_s3 = inlined_call_operand.hbm [shape: f32[2,4,8,8], index: 3, kind: output, shape index: {0}]   ;;  %s1109_s4 = inlined_call_operand.hbm [shape: f32[2,4,8,8], index: 4, kind: output, shape index: {1}]  }
   0x1   :  { %12 = vsyncpa [#allocation3 + $0x1], 0 }
   0x2   :  { %13 = vsyncpa [#allocation5], 0 }
   0x3   :  { %15 = vsyncpa [#allocation5 + $0x1], 0  ;;  %s868_s15 = smov 0   ;;  %s870_s16 = smov 0  }
   0x4   :  { %s872_s17 = smov 0   ;;  %s874_s18 = smov 0  }
   0x5   :  { %s876_s19 = smov 0   ;;  %s878_s20 = smov 0  }
   0x6 LB: > { %s611_s21 = sadd.s32 4294967295, %s839_s20   ;;  %s612_s22 = sadd.s32 4294967294, %s839_s20   ;;  %s839_s20 = sphi %s878_s20, %s21_s20   ;;  %s835_s19 = sphi %s876_s19, %s1116_s19   ;;  %s831_s18 = sphi %s874_s18, %s1115_s18   ;;  %s827_s17 = sphi %s872_s17, %s1114_s17   ;;  %s823_s16 = sphi %s870_s16, %s1113_s16   ;;  %s819_s15 = sphi %s868_s15, %s1112_s15  }
   0x7   : > { %s33_s23 = sadd.s32 1, %s835_s19  ;;  %s112_s24 = sadd.s32 1, %s827_s17 }
   0x8   : > { %p35_p0 = scmp.ge.s32.totalorder %s33_s23, 2  ;;  %p122_p1 = scmp.ne.s32.totalorder %s827_s17, %s823_s16 }
   0x9   : > { %p123_p2 = scmp.eq.s32.totalorder %s611_s21, 1  ;;  %p128_p3 = scmp.ne.s32.totalorder %s823_s16, %s819_s15 }
   0xa   : > { %s1118_s23 = smov (%p35_p0, %s33_s23), 0  ;;  %p129_p5 = scmp.eq.s32.totalorder %s612_s22, 1 }
   0xb   : > { %p908_p4 = por %p123_p2, %p122_p1  ;;  %s107_s26 = ssub.s32 %s835_s19, %s1118_s23 }
   0xc   : > { %p615_p6 = scmp.ge.s32.totalorder %s839_s20, 1  ;;  %p110_p7 = scmp.eq.s32.totalorder %s107_s26, 0 }
   0xd   : > { %p915_p8 = por %p129_p5, %p128_p3  ;;  %p191_p9 = scmp.lt.s32.totalorder %s839_s20, 3 }
   0xe   : > { %s921_s28 = scalar_select %p110_p7, %s827_s17, %s112_s24  }
   0xf   : > { %p192_p10 = pnand %p615_p6, %p191_p9 }
  0x10   : > { %p224_p11 = scmp.lt.s32.totalorder (!%p192_p10), %s831_s18, 1  ;;  %s665_s10 = sshll.u32 (!%p192_p10), %s831_s18, 5 }
  0x11   : > { %195 = sbr.rel (%p192_p10) target bundleno = 189 (0xbd), region = 32  ;;  %s749_s14 = scalar_lea.hbm (!%p192_p10), %s1108_s3, 64 }
  0x16   : > { %v624_v0 = vld [vmem:[%s1106_s1 + $0x38] sm:$0xff]  ;;  %v623_v2 = vld [vmem:[%s1106_s1 + $0x30] sm:$0xff]  ;;  %v622_v4 = vld [vmem:[%s1106_s1 + $0x28] sm:$0xff]  ;;  %s225_s29 = scalar_select %p224_p11, %s831_s18, 1  ;;  %vm236_vm0 = vcmask 261120   ;;  %vm260_vm1 = vcmask 64512  }
  0x17   : > { %v630_v1 = vld [vmem:[%s1107_s2 + $0x38] sm:$0xff]  ;;  %308 = vmatpush.msra.mxu2 %v624_v0  ;;  %v629_v3 = vld [vmem:[%s1107_s2 + $0x30] sm:$0xff]  ;;  %v628_v5 = vld [vmem:[%s1107_s2 + $0x28] sm:$0xff]  ;;  %s497_s18 = scalar_lea.hbm %s1109_s4, %s665_s10 }
  0x18   : > { %335 = vmatpush.msra.mxu3 %v630_v1  ;;  %v235_v6 = vld [vmem:[%s1106_s1 + $0x18] sm:$0xff]  ;;  %v621_v8 = vld [vmem:[%s1106_s1 + $0x20] sm:$0xff]  ;;  %s618_s8 = sshll.u32 %s225_s29, 3  ;;  %v234_v10 = vld [vmem:[%s1106_s1 + $0x10] sm:$0xff]  ;;  %s500_s5 = sshll.u32 %s497_s18, 4  ;;  %s1054_s5 = int_to_ptr.hbm [resolvable:$true] %s500_s5 }
  0x19   : > { %v265_v7 = vld [vmem:[%s1107_s2 + $0x18] sm:$0xff]  ;;  %309 = vmatpush.msra.mxu2 %v623_v2  ;;  %252 = vmatpush.msra.mxu0 %v235_v6  ;;  %v627_v9 = vld [vmem:[%s1107_s2 + $0x20] sm:$0xff]  ;;  %v264_v11 = vld [vmem:[%s1107_s2 + $0x10] sm:$0xff]  ;;  %s230_s21 = scalar_lea.vmem %s1105_s0, %s618_s8  ;;  %s1033_s8 = sand.u32 1, %s823_s16  }
  0x1a   : > { %336 = vmatpush.msra.mxu3 %v629_v3  ;;  %278 = vmatpush.msra.mxu1 %v265_v7  ;;  %v287_v12 = vld [vmem:[%s230_s21] sm:$0xff]  ;;  %v648_v13 = vld [vmem:[%s1106_s1 + $0x78] sm:$0xff]  ;;  %v233_v15 = vld [vmem:[%s1106_s1 + $0x8] sm:$0xff]  ;;  %s616_s9 = sshll.u32 %s1033_s8, 5  ;;  %s479_s21 = scalar_lea.hbm %s1108_s3, %s665_s10 }
  0x1b   : > { %310 = vmatpush.msra.mxu2 %v622_v4  ;;  %v654_v14 = vld [vmem:[%s1107_s2 + $0x78] sm:$0xff]  ;;  %253 = vmatpush.msra.mxu0 %v234_v10  ;;  %v263_v16 = vld [vmem:[%s1107_s2 + $0x8] sm:$0xff]  ;;  %v647_v17 = vld [vmem:[%s1106_s1 + $0x70] sm:$0xff]  ;;  %s216_s11 = scalar_lea.vmem [#allocation2], %s616_s9  ;;  %s223_s12 = scalar_lea.vmem [#allocation4], %s616_s9 }
  0x1c   : > { %337 = vmatpush.msra.mxu3 %v628_v5  ;;  %279 = vmatpush.msra.mxu1 %v264_v11  ;;  %v653_v18 = vld [vmem:[%s1107_s2 + $0x70] sm:$0xff]  ;;  %v232_v19 = vld [vmem:[%s1106_s1] sm:$0xff]  ;;  %v646_v21 = vld [vmem:[%s1106_s1 + $0x68] sm:$0xff]  ;;  %s480_s26 = sshll.u32 %s216_s11, 4  ;;  %s482_s29 = sshll.u32 %s479_s21, 4  ;;  %s1047_s26 = int_to_ptr.vmem [resolvable:$true] %s480_s26  ;;  %s483_s29 = int_to_ptr.hbm [resolvable:$true] %s482_s29 }
  0x1d   : > { %311 = vmatpush.msra.mxu2 %v621_v8  ;;  %v262_v20 = vld [vmem:[%s1107_s2] sm:$0xff]  ;;  %254 = vmatpush.msra.mxu0 %v233_v15  ;;  %v652_v22 = vld [vmem:[%s1107_s2 + $0x68] sm:$0xff]  ;;  %v636_v23 = vld [vmem:[%s1106_s1 + $0x58] sm:$0xff]  ;;  %s498_s30 = sshll.u32 %s223_s12, 4  ;;  %s462_s6 = scalar_lea.sflag [#allocation3], %s1033_s8  ;;  %s1051_s30 = int_to_ptr.vmem [resolvable:$true] %s498_s30 }
  0x1e   : > { %338 = vmatpush.msra.mxu3 %v627_v9  ;;  %625 = vmatmul.msk.f32.vlgmr.msra.gmra.mxu2 %vm236_vm0, %v287_v12  ;;  %v642_v24 = vld [vmem:[%s1107_s2 + $0x58] sm:$0xff]  ;;  %v645_v25 = vld [vmem:[%s1106_s1 + $0x60] sm:$0xff]  ;;  %v635_v27 = vld [vmem:[%s1106_s1 + $0x50] sm:$0xff]  ;;  %s743_s7 = sshra.s32 %s483_s29, 4  ;;  %s744_s7 = int_to_ptr.hbm [resolvable:$true] %s743_s7 }
  0x1f   : > { %631 = vmatmul.msk.f32.vlgmr.msra.gmra.mxu3 %vm236_vm0, %v287_v12  ;;  %424 = vmatpush.msrb.mxu2 %v648_v13  ;;  %v651_v26 = vld [vmem:[%s1107_s2 + $0x60] sm:$0xff]  ;;  %v641_v28 = vld [vmem:[%s1107_s2 + $0x50] sm:$0xff]  ;;  %v634_v29 = vld [vmem:[%s1106_s1 + $0x48] sm:$0xff]  ;;  %s745_s9 = scalar_lea.hbm %s744_s7, 32  ;;  %p750_p1 = scmp.lt.s32.totalorder %s744_s7, %s1108_s3 }
  0x20   : > { %451 = vmatpush.msrb.mxu3 %v654_v14  ;;  %280 = vmatpush.msra.mxu1 %v263_v16  ;;  %v640_v30 = vld [vmem:[%s1107_s2 + $0x48] sm:$0xff]  ;;  %v633_v31 = vld [vmem:[%s1106_s1 + $0x40] sm:$0xff]  ;;  %p746_p12 = scmp.ne.s32.totalorder %s744_s7, %s745_s9  ;;  %p751_p2 = scmp.lt.s32.totalorder %s749_s14, %s745_s9 }
  0x21   : > { %425 = vmatpush.msrb.mxu2 %v647_v17  ;;  %255 = vmatpush.msra.mxu0 %v232_v19  ;;  %v639_v32 = vld [vmem:[%s1107_s2 + $0x40] sm:$0xff] }
  0x22   : > { %452 = vmatpush.msrb.mxu3 %v653_v18  ;;  %281 = vmatpush.msra.mxu1 %v262_v20  ;;  %p747_p13 = pnand %p746_p12, %p908_p4  ;;  %p752_p3 = por %p751_p2, %p750_p1 }
  0x23   : > { %426 = vmatpush.msrb.mxu2 %v646_v21  ;;  %619 = vmatmul.msk.f32.vlgmr.msra.gmra.mxu0 %vm236_vm0, %v287_v12 }
  0x24   : > { %453 = vmatpush.msrb.mxu3 %v652_v22  ;;  %620 = vmatmul.msk.f32.vlgmr.msra.gmra.mxu1 %vm236_vm0, %v287_v12  ;;  %p748_p0 = pneg %p747_p13 }
  0x25   : > { %366 = vmatpush.msrb.mxu0 %v636_v23  ;;  %393 = vmatpush.msrb.mxu1 %v642_v24 }
  0x26   : > { %427 = vmatpush.msrb.mxu2 %v645_v25  ;;  %454 = vmatpush.msrb.mxu3 %v651_v26  ;;  %p753_p5 = pnand %p752_p3, %p748_p0 }
  0x27   : > { %367 = vmatpush.msrb.mxu0 %v635_v27  ;;  %394 = vmatpush.msrb.mxu1 %v641_v28 }
  0x28   : > { %649 = vmatmul.msk.f32.vlgmr.msrb.gmra.mxu2 %vm236_vm0, %v287_v12  ;;  %655 = vmatmul.msk.f32.vlgmr.msrb.gmra.mxu3 %vm236_vm0, %v287_v12 }
  0x29   : > { %368 = vmatpush.msrb.mxu0 %v634_v29  ;;  %395 = vmatpush.msrb.mxu1 %v640_v30 }
  0x2b   : > { %369 = vmatpush.msrb.mxu0 %v633_v31  ;;  %396 = vmatpush.msrb.mxu1 %v639_v32 }
  0x2c   : > { %637 = vmatmul.msk.f32.vlgmr.msrb.gmra.mxu0 %vm236_vm0, %v287_v12  ;;  %643 = vmatmul.msk.f32.vlgmr.msrb.gmra.mxu1 %vm236_vm0, %v287_v12 }
  0xa0   : > { %v257_v33 = vpop.f32.mrf.mxu0 }
  0xa1   : > { %v283_v34 = vpop.f32.mrf.mxu1  ;;  %261 = vst.msk [vmem:[%s216_s11] sm:$0xff] %vm260_vm1, %v257_v33  ;;  %v313_v35 = vpop.f32.mrf.mxu2 }
  0xa2   : > { %v340_v36 = vpop.f32.mrf.mxu3  ;;  %286 = vst.msk [vmem:[%s223_s12] sm:$0xff] %vm260_vm1, %v283_v34 }
  0xa3   : > { %626 = vst.msk [vmem:[%s216_s11 + $0x8] sm:$0xff] %vm260_vm1, %v313_v35 }
  0xa4   : > { %632 = vst.msk [vmem:[%s223_s12 + $0x8] sm:$0xff] %vm260_vm1, %v340_v36 }
  0xa9   : > { %v371_v37 = vpop.f32.mrf.mxu0  ;;  %v398_v38 = vpop.f32.mrf.mxu1 }
  0xaa   : > { %638 = vst.msk [vmem:[%s216_s11 + $0x10] sm:$0xff] %vm260_vm1, %v371_v37 }
  0xab   : > { %644 = vst.msk [vmem:[%s223_s12 + $0x10] sm:$0xff] %vm260_vm1, %v398_v38  ;;  %v429_v39 = vpop.f32.mrf.mxu2  ;;  %v456_v40 = vpop.f32.mrf.mxu3 }
  0xac   : > { %650 = vst.msk [vmem:[%s216_s11 + $0x18] sm:$0xff] %vm260_vm1, %v429_v39 }
  0xad   : > { %656 = vst.msk [vmem:[%s223_s12 + $0x18] sm:$0xff] %vm260_vm1, %v456_v40 }
  0xae   : > { %756 = shalt.err (!%p753_p5)
}
  0xaf   : > { %s841_s11 = smov 128   ;;  %s842_s12 = smov 8  }
  0xb0   : > { %667 = dma.vmem_to_hbm [thread:$0]  (%p908_p4), %s1047_s26, 512, %s483_s29, %s462_s6, %s841_s11, %s841_s11, %s842_s12  }
  0xb1   : > { %s467_s24 = scalar_lea.sflag [#allocation5], %s1033_s8  ;;  %s771_s18 = sshra.s32 %s1054_s5, 4  ;;  %s772_s18 = int_to_ptr.hbm [resolvable:$true] %s771_s18 }
  0xb2   : > { %s773_s10 = scalar_lea.hbm %s772_s18, 32  ;;  %s777_s13 = scalar_lea.hbm %s1109_s4, 64 }
  0xb3   : > { %p774_p6 = scmp.ne.s32.totalorder %s772_s18, %s773_s10  ;;  %p778_p10 = scmp.lt.s32.totalorder %s772_s18, %s1109_s4 }
  0xb4   : > { %p779_p11 = scmp.lt.s32.totalorder %s777_s13, %s773_s10 }
  0xb5   : > { %p775_p7 = pnand %p774_p6, %p908_p4 }
  0xb6   : > { %p780_p12 = por %p779_p11, %p778_p10 }
  0xb7   : > { %p776_p9 = pneg %p775_p7 }
  0xb9   : > { %p781_p13 = pnand %p780_p12, %p776_p9 }
  0xbb   : > { %784 = shalt.err (!%p781_p13)
}
  0xbc   : > { %668 = dma.vmem_to_hbm [thread:$0]  (%p908_p4), %s1051_s30, 512, %s1054_s5, %s467_s24, %s841_s11, %s841_s11, %s842_s12  }
  0xbd PF: > { %p678_p0 = scmp.ge.s32.totalorder %s839_s20, 2  ;;  %s515_s8 = sand.u32 1, %s819_s15  }
  0xbe   : > { %s516_s26 = scalar_lea.sflag [#allocation3], %s515_s8 }
  0xbf   : > { %p672_p1 = pnand %p678_p0, %p915_p8 }
  0xc1   : > { %p673_p2 = pneg %p672_p1 }
  0xc3   : > { %810 = dma.done.wait (%p673_p2), %s516_s26, 512  }
  0xc4   : > { %812 = vsyncadd (%p673_p2), %s516_s26, 4294966784  ;;  %s526_s29 = scalar_lea.sflag [#allocation5], %s515_s8 }
  0xc5   : > { %814 = dma.done.wait (%p673_p2), %s526_s29, 512  }
  0xc6   : > { %816 = vsyncadd (%p673_p2), %s526_s29, 4294966784  ;;  %s21_s20 = sadd.s32 1, %s839_s20   ;;  %s1112_s15 = smov %s823_s16 }
  0xc7   : > { %p18_p3 = scmp.ge.s32.totalorder %s21_s20, 4   ;;  %s1113_s16 = smov %s827_s17 }
  0xc8   : > { %s1114_s17 = smov %s921_s28  ;;  %s1115_s18 = smov %s835_s19 }
  0xc9   : > { %s1116_s19 = smov %s1118_s23  ;;  %20 = sbr.rel (!%p18_p3) target bundleno = 6 (0x6), region = 96 }
  0xce   :  { %532 = vsyncpa [#allocation3], 1 }
  0xcf   :  { %534 = vsyncpa [#allocation3 + $0x1], 1 }
  0xd0   :  { %535 = vsyncpa [#allocation5], 1 }
  0xd1   :  { %537 = vsyncpa [#allocation5 + $0x1], 1 }

</bundles_post_ra>
